<compile_context>
chip_gen: v6e
topology: v6e:2x2x1
jax: 0.10.0
libtpu: 0.0.40
codegen_flags: <defaults>
</compile_context>

<pallas_src>
import math

import jax
import jax.numpy as jnp
from jax.experimental import pallas as pl
from jax.experimental.pallas import tpu as pltpu


# ---------------------------------------------------------------------------
# Fast path: faithful no-op forward.  No pallas_call, no HBM traffic.
# ---------------------------------------------------------------------------
def dummy_forward(x: jax.Array) -> jax.Array:
    """Forward for the Dummy module: pure identity (the module is a no-op)."""
    return x


# ---------------------------------------------------------------------------
# Structural Pallas identity copy (kept for kernelization requirements).
# ---------------------------------------------------------------------------
_MAX_BLOCK_BYTES = 4 << 20        # ~4 MiB per buffer (86% roofline on v6e)
_VMEM_LIMIT_BYTES = 32 << 20      # 2 bufs x double-buffered x 4 MiB = 16 MiB


def _copy_kernel(x_ref, o_ref):
    # Pure pass-through: copy the current VMEM tile to the output tile.
    o_ref[...] = x_ref[...]


def _sublane(itemsize: int) -> int:
    # f32 -> 8, bf16 -> 16, int8 -> 32 rows per packed sublane group.
    return max(8, 32 // max(itemsize, 1))


def _pick_block_rows(rows: int, row_bytes: int, sub: int) -> int:
    """Row-tile height: <= ~4 MiB per buffer, multiple of `sub`, >=2 tiles."""
    if rows <= sub:
        return rows                                   # block == full dim
    cap = max(sub, (_MAX_BLOCK_BYTES // max(row_bytes, 1)) // sub * sub)
    block_rows = min((rows // sub) * sub, cap)
    if rows >= 2 * sub:
        # Guarantee at least 2 grid tiles so v7x can shard across both TCs.
        half = max(sub, ((rows // 2) // sub) * sub)
        block_rows = min(block_rows, half)
    return max(sub, block_rows)


def _lane_dense_layout(total: int, itemsize: int):
    """Pick (rows, cols, block_rows) for a lane-dense 2-D slab of `total`.

    cols is the widest multiple of 128 dividing `total` that still leaves
    rows >= 2*sub (full sublane occupancy + >=2 grid tiles); degrades to
    rows >= sub, then to any divisor.  Returns None if 128 doesn't divide.
    """
    sub = _sublane(itemsize)
    cands = [c for c in (32768, 16384, 8192, 4096, 2048, 1024, 512, 256, 128)
             if total % c == 0]
    if not cands:
        return None
    cols = cands[-1]
    for min_rows in (2 * sub, sub, 1):
        ok = [c for c in cands if total // c >= min_rows]
        if ok:
            cols = ok[0]                               # widest qualifying cols
            break
    rows = total // cols
    block_rows = _pick_block_rows(rows, cols * itemsize, sub)
    return rows, cols, block_rows


def _identity_pallas_2d(x2d: jax.Array, block_rows: int) -> jax.Array:
    rows, cols = x2d.shape
    grid = (pl.cdiv(rows, block_rows),)
    return pl.pallas_call(
        _copy_kernel,
        out_shape=jax.ShapeDtypeStruct((rows, cols), x2d.dtype),
        grid_spec=pltpu.PrefetchScalarGridSpec(
            num_scalar_prefetch=0,
            grid=grid,
            in_specs=[pl.BlockSpec((block_rows, cols), lambda i: (i, 0))],
            out_specs=pl.BlockSpec((block_rows, cols), lambda i: (i, 0)),
        ),
        compiler_params=pltpu.CompilerParams(
            # Copy is embarrassingly parallel over row-tiles (>=2 tiles when
            # possible) so v7x can shard the grid across its two TensorCores.
            dimension_semantics=("parallel",),
            vmem_limit_bytes=_VMEM_LIMIT_BYTES,
        ),
        # Reuse the input's HBM buffer for the output allocation.  NOTE: this
        # does NOT elide the read+write DMA traffic — it only avoids a second
        # HBM allocation.  The zero-traffic path is dummy_forward (return x).
        input_output_aliases={0: 0},
    )(x2d)


@jax.jit
def dummy_forward_pallas(x: jax.Array) -> jax.Array:
    """Pallas identity pass-through over x (structural kernelization)."""
    shape = x.shape
    total = math.prod(shape) if shape else 1
    if x.ndim < 1 or total == 0:
        return x                                       # nothing to copy

    itemsize = jnp.dtype(x.dtype).itemsize
    layout = _lane_dense_layout(total, itemsize)

    if layout is None:
        # Remainder path: element count not a multiple of 128.  Keep the
        # original trailing dim and TILE the leading rows (never a single
        # full-array block — that would blow VMEM for large tensors).
        last = shape[-1]
        lead = total // last
        sub = _sublane(itemsize)
        block_rows = _pick_block_rows(lead, last * itemsize, sub)
        x2d = x.reshape(lead, last)
        return _identity_pallas_2d(x2d, block_rows).reshape(shape)

    rows, cols, block_rows = layout
    # Lane-dense slab: last dim is a large multiple of 128 -> unmasked vst,
    # full-sublane blocks, <=4 MiB per buffer, >=2 grid tiles when possible.
    x2d = x.reshape(rows, cols)
    return _identity_pallas_2d(x2d, block_rows).reshape(shape)


if __name__ == "__main__":
    key = jax.random.PRNGKey(0)
    # Small NCHW input consistent with a generic image-like module.
    x = jax.random.normal(key, (2, 4, 16, 16), dtype=jnp.float32)

    # Fast path: faithful no-op forward (the recommended realization).
    y_fast = dummy_forward(x)
    jax.block_until_ready(y_fast)

    # Structural Pallas identity kernel, exercised and validated.
    y_pallas = dummy_forward_pallas(x)
    jax.block_until_ready(y_pallas)

    assert y_fast.shape == x.shape
    assert y_pallas.shape == x.shape
    assert jnp.array_equal(y_fast, x)
    assert jnp.array_equal(y_pallas, x)

    print("KERNEL_OK")
</pallas_src>

<mosaic_0001>
module attributes {stable_mosaic.version = 11 : i64} {
  func.func @_copy_kernel(%arg0: i32, %arg1: memref<8x128xf32, #tpu.memory_space<vmem>>, %arg2: memref<8x128xf32, #tpu.memory_space<vmem>>) attributes {dimension_semantics = [#tpu.dimension_semantics<parallel>], iteration_bounds = array<i64: 2>, scalar_prefetch = 0 : i64, scratch_operands = 0 : i64, tpu.core_type = #tpu.core_type<tc>, window_params = [{transform_indices = @transform_0, window_bounds = array<i64: 8, 128>}, {transform_indices = @transform_1, window_bounds = array<i64: 8, 128>}]} {
    %c0 = arith.constant 0 : index
    %c0_0 = arith.constant 0 : index
    %0 = vector.load %arg1[%c0, %c0_0] : memref<8x128xf32, #tpu.memory_space<vmem>>, vector<8x128xf32>
    %c0_1 = arith.constant 0 : index
    %c0_2 = arith.constant 0 : index
    %1 = vector.load %arg2[%c0_1, %c0_2] : memref<8x128xf32, #tpu.memory_space<vmem>>, vector<8x128xf32>
    tpu.vector_store %arg2[%c0_1, %c0_2], %0 {strides = array<i32>} : memref<8x128xf32, #tpu.memory_space<vmem>>, vector<8x128xf32>,
    return
  }
  func.func @transform_0(%arg0: i32) -> (i32, i32) {
    %c0_i32 = arith.constant 0 : i32
    %c0_i32_0 = arith.constant 0 : i32
    return %arg0, %c0_i32 : i32, i32
  }
  func.func @transform_1(%arg0: i32) -> (i32, i32) {
    %c0_i32 = arith.constant 0 : i32
    %c0_i32_0 = arith.constant 0 : i32
    return %arg0, %c0_i32 : i32, i32
  }
}

</mosaic_0001>

<bundles_post_ra>
// kernel: dummy_forward_pallas.1
= control target key start
LH: loop header
LB: loop body
LE: loop exit
PB: predicated region body
PF: predicated region fallthrough
CT: control target
= control target key end

     0   :  { %s188_s6 = smov 0   ;;  %s208_s0 = inlined_call_operand.vmem [shape: f32[16,128], index: 0, kind: input, shape index: {}, may-alias: {0,1}]   ;;  %s209_s1 = inlined_call_operand.vmem [shape: f32[16,128], index: 1, kind: output, shape index: {}, may-alias: {0,1}]  }
   0x1 LB: > { %s167_s7 = sadd.s32 4294967295, %s190_s6   ;;  %p171_p0 = scmp.ge.s32.totalorder %s190_s6, 1  ;;  %s190_s6 = sphi %s188_s6, %s11_s6  }
   0x2   : > { %p86_p1 = scmp.lt.s32.totalorder %s190_s6, 3 }
   0x4   : > { %p87_p2 = pnand %p171_p0, %p86_p1 }
   0x5   : > { %p104_p3 = scmp.lt.s32.totalorder (!%p87_p2), %s167_s7, 1 }
   0x6   : > { %90 = sbr.rel (%p87_p2) target bundleno = 16 (0x10), region = 24 }
   0xb   : > { %s211_s7 = smov (!%p104_p3, %s167_s7), 1 }
   0xc   : > { %s172_s8 = sshll.u32 %s211_s7, 3 }
   0xd   : > { %s107_s11 = scalar_lea.vmem %s208_s0, %s172_s8  ;;  %s111_s14 = scalar_lea.vmem %s209_s1, %s172_s8 }
   0xe   : > { %v112_v0 = vld [vmem:[%s107_s11] sm:$0xff] }
   0xf   : > { %113 = vst [vmem:[%s111_s14] sm:$0xff] %v112_v0 }
  0x10 PF: > { %s11_s6 = sadd.s32 1, %s190_s6  }
  0x11   : > { %p8_p4 = scmp.ge.s32.totalorder %s11_s6, 4  }
  0x13   :  { %10 = sbr.rel (!%p8_p4) target bundleno = 1 (0x1), region = 54 }

</bundles_post_ra>
